<compile_context>
chip_gen: v6e
topology: v6e:2x2x1
jax: 0.10.0
libtpu: 0.0.40
codegen_flags: <defaults>
</compile_context>

<pallas_src>
import math

import jax
import jax.numpy as jnp
from jax.experimental import pallas as pl
from jax.experimental.pallas import tpu as pltpu


# ---------------------------------------------------------------------------
# Kernels
# ---------------------------------------------------------------------------

def _alias_view_kernel(x_hbm_ref, o_hbm_ref):
    # Zero-copy path: output buffer aliases the input buffer
    # (input_output_aliases={0: 0}); flatten of a contiguous tensor requires
    # no data movement, so the body is intentionally empty.
    del x_hbm_ref, o_hbm_ref


def _copy_kernel(x_ref, o_ref):
    # Lane-dense identity copy of one VMEM tile.
    o_ref[...] = x_ref[...]


# ---------------------------------------------------------------------------
# Tiling helpers
# ---------------------------------------------------------------------------

_LANE_WIDTHS = (4096, 2048, 1024, 512, 256, 128)


def _round_up(v, m):
    return ((v + m - 1) // m) * m


def _vmem_budget():
    """(vmem_limit_bytes, per-block byte cap) sized per TPU generation."""
    try:
        cap = pltpu.get_tpu_info().vmem_capacity_bytes
    except Exception:
        cap = 64 << 20  # conservative: assume v7x-sized VMEM if query fails
    if cap >= (128 << 20):        # v5e / v6e: 128 MiB physical VMEM
        return 96 << 20, 16 << 20
    return 40 << 20, 8 << 20      # v7x: 64 MiB physical per TensorCore


def _choose_flat_view(n):
    """Pick a (rows, lanes) lane-dense re-view of a length-n flat buffer.

    Prefers the largest lane width (multiple of 128) that still leaves >= 16
    rows, so the grid can be split across two TensorCores.  Returns None if n
    is not a multiple of 128.
    """
    fallback = None
    for lanes in _LANE_WIDTHS:
        if n % lanes == 0:
            rows = n // lanes
            if fallback is None:
                fallback = (rows, lanes)
            if rows >= 16:
                return rows, lanes
    return fallback


# ---------------------------------------------------------------------------
# pallas_call wrappers
# ---------------------------------------------------------------------------

def _flatten_alias(x2):
    """Zero-copy flatten: output aliases the input buffer (no HBM traffic)."""
    B, F = x2.shape
    return pl.pallas_call(
        _alias_view_kernel,
        out_shape=jax.ShapeDtypeStruct((B, F), x2.dtype),
        in_specs=[pl.BlockSpec(memory_space=pl.ANY)],
        out_specs=pl.BlockSpec(memory_space=pl.ANY),
        input_output_aliases={0: 0},
        cost_estimate=pl.CostEstimate(flops=0, transcendentals=0,
                                      bytes_accessed=0),
    )(x2)


def _copy_flat(xf, vmem_limit, block_cap):
    """Tiled copy of a lane-dense (rows, lanes) view; blocks are contiguous."""
    R, L = xf.shape
    item = jnp.dtype(xf.dtype).itemsize
    if R * L * item <= block_cap:
        tile_r = R
    else:
        tile_r = max(8, (block_cap // (L * item)) // 8 * 8)
    # Guarantee >= 2 grid blocks when possible (v7x has 2 TensorCores).
    if tile_r >= R and R >= 16:
        tile_r = _round_up(pl.cdiv(R, 2), 8)
    grid = (pl.cdiv(R, tile_r),)
    return pl.pallas_call(
        _copy_kernel,
        out_shape=jax.ShapeDtypeStruct((R, L), xf.dtype),
        grid=grid,
        in_specs=[pl.BlockSpec((tile_r, L), lambda i: (i, 0))],
        out_specs=pl.BlockSpec((tile_r, L), lambda i: (i, 0)),
        cost_estimate=pl.CostEstimate(flops=0, transcendentals=0,
                                      bytes_accessed=2 * R * L * item),
        compiler_params=pltpu.CompilerParams(
            dimension_semantics=("parallel",),
            vmem_limit_bytes=vmem_limit),
    )(xf)


def _copy_2d_fallback(x2, vmem_limit, block_cap):
    """Tiled copy for (B, F) when B*F is not a multiple of 128 (any shape)."""
    B, F = x2.shape
    item = jnp.dtype(x2.dtype).itemsize

    # Lane tile: multiple of 128 when possible, else full extent (always legal).
    if F % 128 == 0:
        tile_f = min(F, 2048)
    elif F <= 4096:
        tile_f = F
    else:
        tile_f = 2048  # 128-aligned; ragged boundary block is masked by Pallas

    # Sublane (batch) tile: multiple of 8 or full extent, capped by block_cap.
    if B <= 8 or B * tile_f * item <= block_cap:
        tile_b = B
    else:
        tile_b = max(8, (block_cap // (tile_f * item)) // 8 * 8)
    # Expose >= 2 blocks on a parallel axis when the grid would collapse to 1.
    if tile_b >= B and pl.cdiv(F, tile_f) == 1 and B >= 16:
        tile_b = _round_up(pl.cdiv(B, 2), 8)

    grid = (pl.cdiv(B, tile_b), pl.cdiv(F, tile_f))
    return pl.pallas_call(
        _copy_kernel,
        out_shape=jax.ShapeDtypeStruct((B, F), x2.dtype),
        grid=grid,
        in_specs=[pl.BlockSpec((tile_b, tile_f), lambda i, j: (i, j))],
        out_specs=pl.BlockSpec((tile_b, tile_f), lambda i, j: (i, j)),
        cost_estimate=pl.CostEstimate(flops=0, transcendentals=0,
                                      bytes_accessed=2 * B * F * item),
        compiler_params=pltpu.CompilerParams(
            dimension_semantics=("parallel", "parallel"),
            vmem_limit_bytes=vmem_limit),
    )(x2)


def flatten_forward(x, *, zero_copy=True):
    """Pallas Flatten forward: x -> x.reshape(x.shape[0], -1).

    zero_copy=True  : output aliases the (reshaped) input buffer — zero HBM
                      traffic, matching PyTorch `.view` semantics.
    zero_copy=False : materialize a distinct output array via a lane-dense,
                      tiled identity-copy kernel.
    """
    B = x.shape[0]
    F = math.prod(x.shape[1:]) if x.ndim > 1 else 1
    N = B * F
    vmem_limit, block_cap = _vmem_budget()

    if zero_copy:
        return _flatten_alias(x.reshape(B, F))

    flat = _choose_flat_view(N)
    if flat is not None:
        R, L = flat
        out = _copy_flat(x.reshape(R, L), vmem_limit, block_cap)
        return out.reshape(B, F)
    # N not a multiple of 128: legal (8,128)/full-extent blocks on (B, F).
    return _copy_2d_fallback(x.reshape(B, F), vmem_limit, block_cap)


if __name__ == "__main__":
    key = jax.random.PRNGKey(0)
    B, C, H, W = 2, 4, 16, 16
    x = jax.random.normal(key, (B, C, H, W), dtype=jnp.float32)

    # jit so the wrapper reshapes are pure layout re-interpretations (bitcasts).
    flatten = jax.jit(flatten_forward, static_argnames=("zero_copy",))

    # 1) Zero-copy aliased path (default) — `.view` semantics, no HBM traffic.
    y0 = jax.block_until_ready(flatten(x, zero_copy=True))
    assert y0.shape == (B, C * H * W)
    assert jnp.array_equal(y0, x.reshape(B, -1)), "mismatch (alias path)"

    # 2) Explicit-copy path on the lane-dense flat re-view (grid >= 2 blocks).
    y1 = jax.block_until_ready(flatten(x, zero_copy=False))
    assert jnp.array_equal(y1, x.reshape(B, -1)), "mismatch (flat copy path)"

    # 3) Larger batch exercising the multi-block pipelined flat path.
    xb = jax.random.normal(jax.random.PRNGKey(0), (256, 4, 16, 16), jnp.float32)
    yb = jax.block_until_ready(flatten(xb, zero_copy=False))
    assert yb.shape == (256, 4 * 16 * 16)
    assert jnp.array_equal(yb, xb.reshape(256, -1)), "mismatch (tiled path)"

    # 4) Feature count not a multiple of 128 -> hardened (B, F) fallback tiling.
    xo = jax.random.normal(jax.random.PRNGKey(0), (2, 3, 7, 5), jnp.float32)
    yo = jax.block_until_ready(flatten(xo, zero_copy=False))
    assert yo.shape == (2, 3 * 7 * 5)
    assert jnp.array_equal(yo, xo.reshape(2, -1)), "mismatch (fallback path)"

    print("KERNEL_OK")
</pallas_src>

<mosaic_0001>
module attributes {stable_mosaic.version = 11 : i64} {
  func.func @_alias_view_kernel(%arg0: memref<2x1024xf32, #tpu.memory_space<any>>, %arg1: memref<2x1024xf32, #tpu.memory_space<any>>) attributes {dimension_semantics = [], scalar_prefetch = 0 : i64, scratch_operands = 0 : i64, tpu.core_type = #tpu.core_type<tc>} {
    return
  }
}

</mosaic_0001>

<bundles_post_ra>
// kernel: flatten_forward.1
= control target key start
LH: loop header
LB: loop body
LE: loop exit
PB: predicated region body
PF: predicated region fallthrough
CT: control target
= control target key end

     0   :  { %s16_s0 = inlined_call_operand.hbm [shape: f32[2,1024], index: 0, kind: input, shape index: {}, may-alias: {0,1}]   ;;  %s17_s1 = inlined_call_operand.hbm [shape: f32[2,1024], index: 1, kind: output, shape index: {}, may-alias: {0,1}]  }

</bundles_post_ra>
